<compile_context>
chip_gen: v7x
topology: tpu7x:2x2x1
jax: 0.10.0
libtpu: 0.0.40
codegen_flags: <defaults>
</compile_context>

<pallas_src>
import functools

import jax
import jax.numpy as jnp
from jax.experimental import pallas as pl
from jax.experimental.pallas import tpu as pltpu


def _gelu_tanh(x):
    # tanh-approximation GELU; Python-float constants stay weakly typed so the
    # computation runs in x.dtype (bf16 on v6e/v7x, f32 on v5e).
    return 0.5 * x * (1.0 + jnp.tanh(0.7978845608028654 * (x + 0.044715 * x * x * x)))


def _round_up(n, m):
    return ((n + m - 1) // m) * m


def _classifier_kernel(patches_ref,   # (TB*NP, PD)  bf16  VMEM (streamed per tile)
                       w_embed_ref,   # (PD, D)      bf16  VMEM (resident)
                       b_embed_ref,   # (1, D)       f32   VMEM (resident)
                       w_head_ref,    # (D, Cp)      bf16  VMEM (selected head, resident)
                       b_head_ref,    # (1, Cp)      f32   VMEM (selected head, resident)
                       out_ref,       # (TB, Cp)     f32   VMEM
                       *, num_patches, batch_tile, elem_dtype):
    # Patch-embedding "conv" (stride == kernel == patch) as one tall MXU matmul.
    emb = jnp.dot(patches_ref[...], w_embed_ref[...],
                  preferred_element_type=jnp.float32)            # (TB*NP, D) f32 acc
    emb = emb + b_embed_ref[...]                                 # broadcast bias (f32)
    emb = _gelu_tanh(emb.astype(elem_dtype))                     # VPU/EUP elementwise

    # Mean-pool over patches: f32 sum (XLU) then a single f32 scale (VPU).
    emb3 = emb.reshape(batch_tile, num_patches, emb.shape[-1])   # (TB, NP, D)
    features = jnp.sum(emb3.astype(jnp.float32), axis=1) * (1.0 / num_patches)  # (TB, D) f32

    # Selected classification head: features @ W_sel.T + b_sel, f32 accumulation.
    logits = jnp.dot(features.astype(w_head_ref.dtype), w_head_ref[...],
                     preferred_element_type=jnp.float32)         # (TB, Cp)
    out_ref[...] = logits + b_head_ref[...]


def multi_head_image_classifier(params, inputs, head_idx, *, patch_size):
    """Forward pass. inputs: NCHW float32. head_idx: python int or int32 scalar."""
    B, C, H, W = inputs.shape
    P = patch_size
    assert H % P == 0 and W % P == 0
    nph, npw = H // P, W // P
    NP = nph * npw
    PD = C * P * P

    w_embed = params['w_embed']                       # (PD, D)
    b_embed = params['b_embed']                       # (D,)
    heads_w = params['heads_w']                       # (NH, C_out, D) (PyTorch Linear: [out, in])
    heads_b = params['heads_b']                       # (NH, C_out)
    D = w_embed.shape[1]
    NH, C_out, _ = heads_w.shape

    # --- generation-aware knobs -------------------------------------------------
    try:
        vmem_bytes = int(pltpu.get_tpu_info().vmem_capacity_bytes)
    except Exception:
        vmem_bytes = 64 * 1024 * 1024        # conservative (v7x per-TC size)
    vmem_bytes = max(vmem_bytes, 32 * 1024 * 1024)

    try:
        kind = jax.devices()[0].device_kind.lower()
    except Exception:
        kind = ""
    # bf16 elementwise only where the VPU/EUP have bf16 paths (v6e / v7x).
    use_bf16_elem = ("v6" in kind) or ("v7" in kind)
    elem_dtype = jnp.bfloat16 if use_bf16_elem else jnp.float32
    elem_bytes = 2 if use_bf16_elem else 4

    # --- tiling: pick the largest batch tile that fits the VMEM budget ----------
    Cp = _round_up(C_out, 128)                        # pad logits dim -> unmasked vst
    per_row = (2 * NP * PD * 2                        # double-buffered bf16 patch rows
               + NP * D * 4                           # f32 MXU accumulation
               + NP * D * elem_bytes                  # GELU intermediate
               + 2 * Cp * 4)                          # double-buffered f32 logits row
    resident = PD * D * 2 + D * Cp * 2 + (D + Cp) * 4
    budget = int(0.45 * vmem_bytes) - resident
    tb_cap = max(8, (budget // per_row) // 8 * 8)

    B8 = _round_up(B, 8)
    TB = min(tb_cap, B8)                              # never pad far past the real batch
    if B8 >= 16:
        # keep >=2 grid steps so v7x's two TensorCores both get work
        TB = min(TB, _round_up((B8 + 1) // 2, 8))
    TB = max(TB, 8)
    Bp = _round_up(B, TB)
    grid = (Bp // TB,)

    # --- glue: patchify NCHW -> (Bp*NP, PD) bf16 (no PD padding, small batch pad) ---
    x = inputs.reshape(B, C, nph, P, npw, P)
    x = jnp.transpose(x, (0, 2, 4, 1, 3, 5))                         # [B, nph, npw, C, P, P]
    patches = x.reshape(B, NP, PD).astype(jnp.bfloat16)
    if Bp != B:
        patches = jnp.pad(patches, ((0, Bp - B), (0, 0), (0, 0)))
    patches_flat = patches.reshape(Bp * NP, PD)                      # (Bp*NP, PD) bf16

    # --- weights: only the selected head is sliced / transposed / padded --------
    w_embed_b = w_embed.astype(jnp.bfloat16)                         # (PD, D)
    b_embed_r = b_embed.reshape(1, D).astype(jnp.float32)            # (1, D)
    w_sel = heads_w[head_idx]                                        # (C_out, D)
    b_sel = heads_b[head_idx]                                        # (C_out,)
    w_head = jnp.zeros((D, Cp), jnp.bfloat16).at[:, :C_out].set(
        jnp.transpose(w_sel).astype(jnp.bfloat16))                   # (D, Cp)
    b_head = jnp.zeros((1, Cp), jnp.float32).at[0, :C_out].set(b_sel.astype(jnp.float32))

    # --- VMEM limit + cost estimate ---------------------------------------------
    actual = (2 * TB * NP * PD * 2 + resident
              + TB * NP * D * 4 + TB * NP * D * elem_bytes
              + 2 * TB * Cp * 4)
    vmem_limit = int(min(max(2 * actual, 16 * 1024 * 1024),
                         max(int(0.7 * vmem_bytes), 16 * 1024 * 1024)))
    cost = pl.CostEstimate(
        flops=2 * Bp * NP * PD * D + 2 * Bp * D * C_out,
        transcendentals=Bp * NP * D,
        bytes_accessed=(Bp * NP * PD * 2 + PD * D * 2 + D * Cp * 2
                        + (D + Cp) * 4 + Bp * Cp * 4))

    grid_spec = pltpu.PrefetchScalarGridSpec(
        num_scalar_prefetch=0,
        grid=grid,
        in_specs=[
            # streamed per batch-tile (double-buffered by Pallas); last dim == full dim (no pad):
            pl.BlockSpec((TB * NP, PD), lambda i: (i, 0)),
            # VMEM-resident across the whole grid (constant block index):
            pl.BlockSpec((PD, D), lambda i: (0, 0)),
            pl.BlockSpec((1, D), lambda i: (0, 0)),
            pl.BlockSpec((D, Cp), lambda i: (0, 0)),
            pl.BlockSpec((1, Cp), lambda i: (0, 0)),
        ],
        out_specs=pl.BlockSpec((TB, Cp), lambda i: (i, 0)),
    )

    out_p = pl.pallas_call(
        functools.partial(_classifier_kernel, num_patches=NP, batch_tile=TB,
                          elem_dtype=elem_dtype),
        out_shape=jax.ShapeDtypeStruct((Bp, Cp), jnp.float32),
        grid_spec=grid_spec,
        cost_estimate=cost,
        compiler_params=pltpu.CompilerParams(
            dimension_semantics=("parallel",),      # batch tiles shard across TCs on v7x megacore
            vmem_limit_bytes=vmem_limit),
    )(patches_flat, w_embed_b, b_embed_r, w_head, b_head)

    return out_p[:B, :C_out]


def _reference(params, inputs, head_idx, *, patch_size):
    """Pure-JAX f32 reference for correctness checking."""
    B, C, H, W = inputs.shape
    P = patch_size
    nph, npw = H // P, W // P
    x = inputs.reshape(B, C, nph, P, npw, P)
    x = jnp.transpose(x, (0, 2, 4, 1, 3, 5)).reshape(B, nph * npw, C * P * P)
    emb = x @ params['w_embed'] + params['b_embed']
    emb = _gelu_tanh(emb)
    feats = emb.mean(axis=1)
    w = params['heads_w'][head_idx]
    b = params['heads_b'][head_idx]
    return feats @ w.T + b


if __name__ == "__main__":
    # Small, module-consistent shapes.
    C, H, W = 4, 16, 16                # NCHW images
    PATCH = 4
    D = 128                            # encoder feature dim
    NUM_HEADS = 3                      # len(classification_heads)
    NUM_CLASSES = 16                   # each head: nn.Linear(D, NUM_CLASSES)
    patch_dim = C * PATCH * PATCH

    key = jax.random.PRNGKey(0)
    k_x, k_we, k_be, k_hw, k_hb, k_x2 = jax.random.split(key, 6)

    params = {
        'w_embed': jax.random.normal(k_we, (patch_dim, D), jnp.float32) * 0.05,
        'b_embed': jax.random.normal(k_be, (D,), jnp.float32) * 0.01,
        'heads_w': jax.random.normal(k_hw, (NUM_HEADS, NUM_CLASSES, D), jnp.float32) * 0.05,
        'heads_b': jax.random.normal(k_hb, (NUM_HEADS, NUM_CLASSES), jnp.float32) * 0.01,
    }

    # Test 1: spec-sized batch (B=2); batch padded up to one 8-row tile -> grid=(1,).
    B1 = 2
    inputs1 = jax.random.normal(k_x, (B1, C, H, W), jnp.float32)
    out1 = multi_head_image_classifier(params, inputs1, 1, patch_size=PATCH)
    out1 = jax.block_until_ready(out1)
    ref1 = _reference(params, inputs1, 1, patch_size=PATCH)
    assert out1.shape == (B1, NUM_CLASSES)
    assert jnp.allclose(out1, ref1, atol=2e-2, rtol=2e-2), "mismatch vs reference (B=2)"

    # Test 2: larger batch exercises the multi-tile pipelined grid (>=2 steps) and a
    # different selected head.
    B2 = 32
    inputs2 = jax.random.normal(k_x2, (B2, C, H, W), jnp.float32)
    out2 = multi_head_image_classifier(params, inputs2, 2, patch_size=PATCH)
    out2 = jax.block_until_ready(out2)
    ref2 = _reference(params, inputs2, 2, patch_size=PATCH)
    assert out2.shape == (B2, NUM_CLASSES)
    assert jnp.allclose(out2, ref2, atol=2e-2, rtol=2e-2), "mismatch vs reference (B=32)"

    print("KERNEL_OK")
</pallas_src>

<mosaic_0001>
module attributes {stable_mosaic.version = 11 : i64} {
  func.func @_classifier_kernel(%arg0: i32, %arg1: memref<128x64xbf16, #tpu.memory_space<vmem>>, %arg2: memref<64x128xbf16, #tpu.memory_space<vmem>>, %arg3: memref<1x128xf32, #tpu.memory_space<vmem>>, %arg4: memref<128x128xbf16, #tpu.memory_space<vmem>>, %arg5: memref<1x128xf32, #tpu.memory_space<vmem>>, %arg6: memref<8x128xf32, #tpu.memory_space<vmem>>) attributes {dimension_semantics = [#tpu.dimension_semantics<parallel>], iteration_bounds = array<i64: 1>, scalar_prefetch = 0 : i64, scratch_operands = 0 : i64, tpu.core_type = #tpu.core_type<tc>, window_params = [{transform_indices = @transform_0, window_bounds = array<i64: 128, 64>}, {pipeline_mode = #tpu.pipeline_mode<synchronous>, transform_indices = @transform_1, window_bounds = array<i64: 64, 128>}, {pipeline_mode = #tpu.pipeline_mode<synchronous>, transform_indices = @transform_2, window_bounds = array<i64: 1, 128>}, {pipeline_mode = #tpu.pipeline_mode<synchronous>, transform_indices = @transform_3, window_bounds = array<i64: 128, 128>}, {pipeline_mode = #tpu.pipeline_mode<synchronous>, transform_indices = @transform_4, window_bounds = array<i64: 1, 128>}, {transform_indices = @transform_5, window_bounds = array<i64: 8, 128>}]} {
    %c0 = arith.constant 0 : index
    %c0_0 = arith.constant 0 : index
    %0 = vector.load %arg1[%c0, %c0_0] : memref<128x64xbf16, #tpu.memory_space<vmem>>, vector<128x64xbf16>
    %c0_1 = arith.constant 0 : index
    %c0_2 = arith.constant 0 : index
    %1 = vector.load %arg2[%c0_1, %c0_2] : memref<64x128xbf16, #tpu.memory_space<vmem>>, vector<64x128xbf16>
    %cst = arith.constant dense<0.000000e+00> : vector<128x128xf32>
    %2 = tpu.matmul %0, %1, %cst {dimension_numbers = #tpu.dot_dimension_numbers<[1], [0], [0], [1], [0, 0, 1, 1], [], []>} : vector<128x64xbf16>, vector<64x128xbf16>, vector<128x128xf32> -> vector<128x128xf32>
    %c0_3 = arith.constant 0 : index
    %c0_4 = arith.constant 0 : index
    %3 = vector.load %arg3[%c0_3, %c0_4] : memref<1x128xf32, #tpu.memory_space<vmem>>, vector<1x128xf32>
    %4 = vector.broadcast %3 : vector<1x128xf32> to vector<128x128xf32>
    %5 = arith.addf %2, %4 : vector<128x128xf32>
    %cst_5 = arith.constant 5.000000e-01 : f32
    %6 = vector.broadcast %cst_5 : f32 to vector<128x128xf32>
    %7 = arith.mulf %6, %5 : vector<128x128xf32>
    %cst_6 = arith.constant 4.471500e-02 : f32
    %8 = vector.broadcast %cst_6 : f32 to vector<128x128xf32>
    %9 = arith.mulf %8, %5 : vector<128x128xf32>
    %10 = arith.mulf %9, %5 : vector<128x128xf32>
    %11 = arith.mulf %10, %5 : vector<128x128xf32>
    %12 = arith.addf %5, %11 : vector<128x128xf32>
    %cst_7 = arith.constant 0.797884583 : f32
    %13 = vector.broadcast %cst_7 : f32 to vector<128x128xf32>
    %14 = arith.mulf %13, %12 : vector<128x128xf32>
    %15 = math.tanh %14 : vector<128x128xf32>
    %cst_8 = arith.constant 1.000000e+00 : f32
    %16 = vector.broadcast %cst_8 : f32 to vector<128x128xf32>
    %17 = arith.addf %16, %15 : vector<128x128xf32>
    %18 = arith.mulf %7, %17 : vector<128x128xf32>
    %19 = vector.shape_cast %18 : vector<128x128xf32> to vector<8x16x128xf32>
    %cst_9 = arith.constant dense<0.000000e+00> : vector<8x128xf32>
    %20 = vector.multi_reduction <add>, %19, %cst_9 [1] : vector<8x16x128xf32> to vector<8x128xf32>
    %cst_10 = arith.constant 6.250000e-02 : f32
    %21 = vector.broadcast %cst_10 : f32 to vector<8x128xf32>
    %22 = arith.mulf %20, %21 : vector<8x128xf32>
    %23 = arith.truncf %22 : vector<8x128xf32> to vector<8x128xbf16>
    %c0_11 = arith.constant 0 : index
    %c0_12 = arith.constant 0 : index
    %24 = vector.load %arg4[%c0_11, %c0_12] : memref<128x128xbf16, #tpu.memory_space<vmem>>, vector<128x128xbf16>
    %cst_13 = arith.constant dense<0.000000e+00> : vector<8x128xf32>
    %25 = tpu.matmul %23, %24, %cst_13 {dimension_numbers = #tpu.dot_dimension_numbers<[1], [0], [0], [1], [0, 0, 1, 1], [], []>} : vector<8x128xbf16>, vector<128x128xbf16>, vector<8x128xf32> -> vector<8x128xf32>
    %c0_14 = arith.constant 0 : index
    %c0_15 = arith.constant 0 : index
    %26 = vector.load %arg5[%c0_14, %c0_15] : memref<1x128xf32, #tpu.memory_space<vmem>>, vector<1x128xf32>
    %27 = vector.broadcast %26 : vector<1x128xf32> to vector<8x128xf32>
    %28 = arith.addf %25, %27 : vector<8x128xf32>
    %c0_16 = arith.constant 0 : index
    %c0_17 = arith.constant 0 : index
    %29 = vector.load %arg6[%c0_16, %c0_17] : memref<8x128xf32, #tpu.memory_space<vmem>>, vector<8x128xf32>
    tpu.vector_store %arg6[%c0_16, %c0_17], %28 {strides = array<i32>} : memref<8x128xf32, #tpu.memory_space<vmem>>, vector<8x128xf32>,
    return
  }
  func.func @transform_0(%arg0: i32) -> (i32, i32) {
    %c0_i32 = arith.constant 0 : i32
    %c0_i32_0 = arith.constant 0 : i32
    return %arg0, %c0_i32 : i32, i32
  }
  func.func @transform_1(%arg0: i32) -> (i32, i32) {
    %c0_i32 = arith.constant 0 : i32
    %c0_i32_0 = arith.constant 0 : i32
    %c0_i32_1 = arith.constant 0 : i32
    return %c0_i32, %c0_i32_0 : i32, i32
  }
  func.func @transform_2(%arg0: i32) -> (i32, i32) {
    %c0_i32 = arith.constant 0 : i32
    %c0_i32_0 = arith.constant 0 : i32
    %c0_i32_1 = arith.constant 0 : i32
    return %c0_i32, %c0_i32_0 : i32, i32
  }
  func.func @transform_3(%arg0: i32) -> (i32, i32) {
    %c0_i32 = arith.constant 0 : i32
    %c0_i32_0 = arith.constant 0 : i32
    %c0_i32_1 = arith.constant 0 : i32
    return %c0_i32, %c0_i32_0 : i32, i32
  }
  func.func @transform_4(%arg0: i32) -> (i32, i32) {
    %c0_i32 = arith.constant 0 : i32
    %c0_i32_0 = arith.constant 0 : i32
    %c0_i32_1 = arith.constant 0 : i32
    return %c0_i32, %c0_i32_0 : i32, i32
  }
  func.func @transform_5(%arg0: i32) -> (i32, i32) {
    %c0_i32 = arith.constant 0 : i32
    %c0_i32_0 = arith.constant 0 : i32
    return %arg0, %c0_i32 : i32, i32
  }
}

</mosaic_0001>

<bundles_post_ra>
// kernel: tpu_custom_call.1
= control target key start
LH: loop header
LB: loop body
LE: loop exit
PB: predicated region body
PF: predicated region fallthrough
CT: control target
= control target key end

     0   :  { %vm117_vm0 = vcmask 523264   ;;  %s1026_s0 = inlined_call_operand.vmem [shape: bf16[128,64], index: 0, kind: input, shape index: {}]   ;;  %s1027_s1 = inlined_call_operand.vmem [shape: bf16[64,128], index: 1, kind: input, shape index: {}]   ;;  %s1028_s2 = inlined_call_operand.vmem [shape: f32[1,128], index: 2, kind: input, shape index: {}]   ;;  %s1029_s3 = inlined_call_operand.vmem [shape: bf16[128,128], index: 3, kind: input, shape index: {}]   ;;  %s1030_s4 = inlined_call_operand.vmem [shape: f32[1,128], index: 4, kind: input, shape index: {}]   ;;  %s1031_s5 = inlined_call_operand.hbm [shape: f32[8,128], index: 5, kind: output, shape index: {}]  }
   0x1   :  { %v711_v0 = vld [vmem:[%s1027_s1] sm:$0xff]   ;;  %v712_v1 = vld [vmem:[%s1027_s1 + $0x8] sm:$0xff]   ;;  %v713_v2 = vld [vmem:[%s1027_s1 + $0x10] sm:$0xff]  }
   0x2   :  { %664 = vmatprep.subr.bf16.mxu0 %v711_v0  ;;  %v715_v3 = vld [vmem:[%s1026_s0] sm:$0xff]   ;;  %v714_v4 = vld [vmem:[%s1027_s1 + $0x18] sm:$0xff]   ;;  %v716_v5 = vld [vmem:[%s1026_s0 + $0x8] sm:$0xff]  }
   0x3   :  { %665 = vmatpush3.bf16.msra.mxu0 %v711_v0  ;;  %672 = vmatprep.mubr.msk.bf16.mxu0 %vm117_vm0, %v715_v3  ;;  %v717_v6 = vld [vmem:[%s1026_s0 + $0x10] sm:$0xff]  }
   0x4   :  { %666 = vmatprep.subr.bf16.mxu0 %v712_v1 }
   0x7   :  { %667 = vmatpush3.bf16.msra.mxu0 %v712_v1 }
   0x8   :  { %668 = vmatprep.subr.bf16.mxu0 %v713_v2 }
   0xb   :  { %669 = vmatpush3.bf16.msra.mxu0 %v713_v2 }
   0xc   :  { %670 = vmatprep.subr.bf16.mxu0 %v714_v4 }
   0xf   :  { %671 = vmatpush3.bf16.msra.mxu0 %v714_v4 }
  0x10   :  { %10 = vsyncpa [#allocation3], 0  ;;  %v718_v7 = vld [vmem:[%s1026_s0 + $0x18] sm:$0xff]   ;;  %v719_v8 = vld [vmem:[%s1026_s0 + $0x20] sm:$0xff]   ;;  %v787_v13 = vmov 0.0   ;;  %vm788_vm1 = vmmov 0  }
  0x11   :  { %v720_v9 = vld [vmem:[%s1026_s0 + $0x28] sm:$0xff]   ;;  %v721_v10 = vld [vmem:[%s1026_s0 + $0x30] sm:$0xff]   ;;  %v722_v11 = vld [vmem:[%s1026_s0 + $0x38] sm:$0xff]   ;;  %688 = vmatprep.subr.bf16.mxu1 %v787_v13  ;;  %704 = vmatprep.mubr.msk.bf16.mxu1 %vm788_vm1, %v787_v13  ;;  %vm494_vm2 = vcmask 1041409   ;;  %vm496_vm3 = vcmask 1042434   ;;  %vm498_vm4 = vcmask 1043459  }
  0x12   :  { %673 = vmatmul.mubr.msk.bf16.vlgmr.msra.gmra.mrb[0].mxu0 %vm117_vm0, %v716_v5  ;;  %v723_v12 = vld [vmem:[%s1029_s3] sm:$0xff]   ;;  %v724_v14 = vld [vmem:[%s1029_s3 + $0x8] sm:$0xff]   ;;  %v725_v15 = vld [vmem:[%s1029_s3 + $0x10] sm:$0xff]   ;;  %vm500_vm5 = vcmask 1044484   ;;  %vm502_vm6 = vcmask 1045509   ;;  %vm504_vm7 = vcmask 1046534  }
  0x13   :  { %676 = vmatprep.mubr.msk.bf16.mxu0 %vm117_vm0, %v717_v6  ;;  %689 = vmatpush3.bf16.msra.mxu1 %v723_v12  ;;  %v726_v16 = vld [vmem:[%s1029_s3 + $0x18] sm:$0xff]   ;;  %v727_v17 = vld [vmem:[%s1029_s3 + $0x20] sm:$0xff]   ;;  %v728_v18 = vld [vmem:[%s1029_s3 + $0x28] sm:$0xff]   ;;  %vm506_vm8 = vcmask 1047559   ;;  %s789_s8 = smov [#allocation2]  }
  0x14   :  { %690 = vmatprep.subr.bf16.mxu1 %v787_v13  ;;  %v729_v19 = vld [vmem:[%s1029_s3 + $0x30] sm:$0xff]   ;;  %v730_v20 = vld [vmem:[%s1029_s3 + $0x38] sm:$0xff]   ;;  %v891_v21 = vld [vmem:[%s1028_s2] ss:$0 sm:$0xff]  ;;  %s605_s1 = sshll.u32 %s789_s8, 4  ;;  %s606_s1 = int_to_ptr.vmem [resolvable:$true] %s605_s1 }
  0x15   :  { %s763_s9 = scalar_lea.vmem %s606_s1, 128  ;;  %p768_p1 = scmp.lt.s32.totalorder %s606_s1, %s606_s1 }
  0x16   :  { %p764_p0 = scmp.ne.s32.totalorder %s606_s1, %s763_s9  ;;  %p769_p2 = scmp.lt.s32.totalorder %s763_s9, %s763_s9 }
  0x17   :  { %691 = vmatpush3.bf16.msra.mxu1 %v724_v14 }
  0x18   :  { %692 = vmatprep.subr.bf16.mxu1 %v787_v13  ;;  %p770_p3 = por %p769_p2, %p768_p1 }
  0x1a   :  { %677 = vmatmul.mubr.msk.bf16.gmra.mrb[4].mxu0 %vm117_vm0, %v718_v7  ;;  %p771_p4 = pnand %p770_p3, %p764_p0 }
  0x1b   :  { %680 = vmatprep.mubr.msk.bf16.mxu0 %vm117_vm0, %v719_v8  ;;  %693 = vmatpush3.bf16.msra.mxu1 %v725_v15 }
  0x1c   :  { %694 = vmatprep.subr.bf16.mxu1 %v787_v13 }
  0x1f   :  { %695 = vmatpush3.bf16.msra.mxu1 %v726_v16 }
  0x20   :  { %696 = vmatprep.subr.bf16.mxu1 %v787_v13 }
  0x22   :  { %681 = vmatmul.mubr.msk.bf16.gmra.mrb[8].mxu0 %vm117_vm0, %v720_v9 }
  0x23   :  { %684 = vmatprep.mubr.msk.bf16.mxu0 %vm117_vm0, %v721_v10  ;;  %697 = vmatpush3.bf16.msra.mxu1 %v727_v17 }
  0x24   :  { %698 = vmatprep.subr.bf16.mxu1 %v787_v13 }
  0x27   :  { %699 = vmatpush3.bf16.msra.mxu1 %v728_v18 }
  0x28   :  { %700 = vmatprep.subr.bf16.mxu1 %v787_v13 }
  0x2a   :  { %685 = vmatmul.mubr.msk.bf16.gmra.mrb[12].mxu0 %vm117_vm0, %v722_v11 }
  0x2b   :  { %701 = vmatpush3.bf16.msra.mxu1 %v729_v19 }
  0x2c   :  { %702 = vmatprep.subr.bf16.mxu1 %v787_v13 }
  0x2f   :  { %703 = vmatpush3.bf16.msra.mxu1 %v730_v20 }
  0xe5   :  { %v674_v22 = vpop.f32.mrb[0].mxu0 }
  0xe6   :  { %v185_v23 = vadd.f32 %v674_v22, %v891_v21  ;;  %v176_v24 = vpop.f32.mrb[1].mxu0 }
  0xe7   :  { %v177_v25 = vadd.f32 %v891_v21, %v176_v24  ;;  %v675_v26 = vpop.f32.mrb[2].mxu0 }
  0xe8   :  { %v257_v27 = vmul.f32 0.044715, %v185_v23  ;;  %v896_v28 = vadd.f32 %v675_v26, %v891_v21  ;;  %v179_v29 = vpop.f32.mrb[3].mxu0  ;;  %v241_v11 = vmul.f32 0.5, %v185_v23 }
  0xe9   :  { %v255_v30 = vmul.f32 0.044715, %v177_v25  ;;  %v899_v31 = vadd.f32 %v891_v21, %v179_v29  ;;  %v239_v16 = vmul.f32 0.5, %v177_v25 }
  0xea   :  { %v273_v32 = vmul.f32 %v257_v27, %v185_v23  ;;  %v258_v33 = vmul.f32 0.044715, %v896_v28 }
  0xeb   :  { %v271_v34 = vmul.f32 %v255_v30, %v177_v25  ;;  %v256_v35 = vmul.f32 0.044715, %v899_v31  ;;  %v240_v29 = vmul.f32 0.5, %v899_v31 }
  0xec   :  { %v289_v36 = vmul.f32 %v273_v32, %v185_v23  ;;  %v274_v37 = vmul.f32 %v258_v33, %v896_v28 }
  0xed   :  { %v287_v38 = vmul.f32 %v271_v34, %v177_v25  ;;  %v272_v39 = vmul.f32 %v256_v35, %v899_v31  ;;  %v678_v40 = vpop.f32.mrb[4].mxu0 }
  0xee   :  { %v305_v41 = vadd.f32 %v289_v36, %v185_v23  ;;  %v290_v42 = vmul.f32 %v274_v37, %v896_v28  ;;  %v907_v43 = vadd.f32 %v678_v40, %v891_v21  ;;  %v192_v44 = vpop.f32.mrb[5].mxu0  ;;  %v242_v23 = vmul.f32 0.5, %v896_v28 }
  0xef   :  { %v303_v45 = vadd.f32 %v287_v38, %v177_v25  ;;  %v288_v46 = vmul.f32 %v272_v39, %v899_v31  ;;  %v911_v47 = vadd.f32 %v891_v21, %v192_v44  ;;  %v679_v48 = vpop.f32.mrb[6].mxu0 }
  0xf0   :  { %v321_v49 = vmul.f32 0.7978846, %v305_v41  ;;  %v306_v50 = vadd.f32 %v290_v42, %v896_v28  ;;  %v261_v51 = vmul.f32 0.044715, %v907_v43  ;;  %v195_v52 = vpop.f32.mrb[7].mxu0  ;;  %v919_v58 = vadd.f32 %v679_v48, %v891_v21 }
  0xf1   :  { %v319_v53 = vmul.f32 0.7978846, %v303_v45  ;;  %v304_v54 = vadd.f32 %v288_v46, %v899_v31  ;;  %v259_v55 = vmul.f32 0.044715, %v911_v47  ;;  %v923_v61 = vadd.f32 %v891_v21, %v195_v52 }
  0xf2   :  { %731 = vtanh.f32 %v321_v49  ;;  %v322_v56 = vmul.f32 0.7978846, %v306_v50  ;;  %v277_v57 = vmul.f32 %v261_v51, %v907_v43  ;;  %v262_v63 = vmul.f32 0.044715, %v919_v58 }
  0xf3   :  { %733 = vtanh.f32 %v319_v53  ;;  %v320_v59 = vmul.f32 0.7978846, %v304_v54  ;;  %v275_v60 = vmul.f32 %v259_v55, %v911_v47  ;;  %v260_v1 = vmul.f32 0.044715, %v923_v61 }
  0xf4   :  { %735 = vtanh.f32 %v322_v56  ;;  %v293_v62 = vmul.f32 %v277_v57, %v907_v43  ;;  %v278_v4 = vmul.f32 %v262_v63, %v919_v58 }
  0xf5   :  { %737 = vtanh.f32 %v320_v59  ;;  %v291_v0 = vmul.f32 %v275_v60, %v911_v47  ;;  %v682_v2 = vpop.f32.mrb[8].mxu0  ;;  %v276_v8 = vmul.f32 %v260_v1, %v923_v61  ;;  %v245_v1 = vmul.f32 0.5, %v907_v43 }
  0xf6   :  { %v309_v3 = vadd.f32 %v293_v62, %v907_v43  ;;  %v932_v5 = vadd.f32 %v682_v2, %v891_v21  ;;  %v208_v6 = vpop.f32.mrb[9].mxu0  ;;  %v294_v13 = vmul.f32 %v278_v4, %v919_v58 }
  0xf7   :  { %v307_v7 = vadd.f32 %v291_v0, %v911_v47  ;;  %v937_v9 = vadd.f32 %v891_v21, %v208_v6  ;;  %v683_v10 = vpop.f32.mrb[10].mxu0  ;;  %v292_v18 = vmul.f32 %v276_v8, %v923_v61  ;;  %v243_v6 = vmul.f32 0.5, %v911_v47 }
  0xf8   :  { %v325_v12 = vmul.f32 0.7978846, %v309_v3  ;;  %v265_v14 = vmul.f32 0.044715, %v932_v5  ;;  %v211_v15 = vpop.f32.mrb[11].mxu0  ;;  %v310_v20 = vadd.f32 %v294_v13, %v919_v58  ;;  %v946_v24 = vadd.f32 %v683_v10, %v891_v21 }
  0xf9   :  { %v323_v17 = vmul.f32 0.7978846, %v307_v7  ;;  %v263_v19 = vmul.f32 0.044715, %v937_v9  ;;  %v308_v26 = vadd.f32 %v292_v18, %v923_v61  ;;  %v956_v28 = vadd.f32 %v891_v21, %v211_v15 }
  0xfa   :  { %739 = vtanh.f32 %v325_v12  ;;  %v281_v22 = vmul.f32 %v265_v14, %v932_v5  ;;  %v326_v30 = vmul.f32 0.7978846, %v310_v20  ;;  %v266_v33 = vmul.f32 0.044715, %v946_v24 }
  0xfb   :  { %741 = vtanh.f32 %v323_v17  ;;  %v279_v25 = vmul.f32 %v263_v19, %v937_v9  ;;  %v324_v36 = vmul.f32 0.7978846, %v308_v26  ;;  %v264_v57 = vmul.f32 0.044715, %v956_v28 }
  0xfc   :  { %v732_v27 = vpop.eup %731  ;;  %v297_v32 = vmul.f32 %v281_v22, %v932_v5  ;;  %743 = vtanh.f32 %v326_v30  ;;  %v282_v31 = vmul.f32 %v266_v33, %v946_v24  ;;  %v246_v12 = vmul.f32 0.5, %v919_v58 }
  0xfd   :  { %v734_v34 = vpop.eup %733  ;;  %v353_v35 = vadd.f32 1.0, %v732_v27  ;;  %v295_v37 = vmul.f32 %v279_v25, %v937_v9  ;;  %v686_v38 = vpop.f32.mrb[12].mxu0  ;;  %745 = vtanh.f32 %v324_v36  ;;  %v280_v2 = vmul.f32 %v264_v57, %v956_v28 }
  0xfe   :  { %v736_v39 = vpop.eup %735  ;;  %v351_v40 = vadd.f32 1.0, %v734_v34  ;;  %v313_v41 = vadd.f32 %v297_v32, %v932_v5  ;;  %v224_v42 = vpop.f32.mrb[13].mxu0  ;;  %v298_v53 = vmul.f32 %v282_v31, %v946_v24  ;;  %v966_v59 = vadd.f32 %v686_v38, %v891_v21 }
  0xff   :  { %v738_v44 = vpop.eup %737  ;;  %v369_v45 = vmul.f32 %v353_v35, %v241_v11  ;;  %v354_v46 = vadd.f32 1.0, %v736_v39  ;;  %v311_v48 = vadd.f32 %v295_v37, %v937_v9  ;;  %v687_v49 = vpop.f32.mrb[14].mxu0  ;;  %v970_v63 = vadd.f32 %v891_v21, %v224_v42 }
 0x100   :  { %v367_v50 = vmul.f32 %v351_v40, %v239_v16  ;;  %v352_v51 = vadd.f32 1.0, %v738_v44  ;;  %v329_v52 = vmul.f32 0.7978846, %v313_v41  ;;  %v962_v54 = vpop.f32.mrb[15].mxu0  ;;  %v314_v62 = vadd.f32 %v298_v53, %v946_v24 }
 0x101   :  { %v370_v55 = vmul.f32 %v354_v46, %v242_v23  ;;  %v327_v56 = vmul.f32 0.7978846, %v311_v48  ;;  %v269_v8 = vmul.f32 0.044715, %v966_v59  ;;  %v296_v13 = vmul.f32 %v280_v2, %v956_v28 }
 0x102   :  { %v368_v60 = vmul.f32 %v352_v51, %v240_v29  ;;  %747 = vtanh.f32 %v329_v52  ;;  %v330_v7 = vmul.f32 0.7978846, %v314_v62  ;;  %v267_v14 = vmul.f32 0.044715, %v970_v63 }
 0x103   :  { %v390_v0 = vadd.f32 %v370_v55, %v369_v45  ;;  %749 = vtanh.f32 %v327_v56  ;;  %v285_v16 = vmul.f32 %v269_v8, %v966_v59  ;;  %v244_v18 = vmul.f32 0.5, %v923_v61 }
 0x104   :  { %v740_v3 = vpop.eup %739  ;;  %v383_v4 = vadd.f32 %v368_v60, %v367_v50  ;;  %751 = vtanh.f32 %v330_v7  ;;  %v312_v47 = vadd.f32 %v296_v13, %v956_v28  ;;  %v283_v19 = vmul.f32 %v267_v14, %v970_v63 }
 0x105   :  { %v742_v10 = vpop.eup %741  ;;  %v391_v11 = vrot.slane %v390_v0, 4  ;;  %v357_v43 = vadd.f32 1.0, %v740_v3  ;;  %v301_v58 = vmul.f32 %v285_v16, %v966_v59  ;;  %v985_v26 = vadd.f32 %v687_v49, %v891_v21 }
 0x106   :  { %v384_v15 = vrot.slane %v383_v4, 4  ;;  %v744_v20 = vpop.eup %743  ;;  %v355_v23 = vadd.f32 1.0, %v742_v10  ;;  %v249_v30 = vmul.f32 0.5, %v932_v5  ;;  %v328_v32 = vmul.f32 0.7978846, %v312_v47 }
 0x107   :  { %v392_v17 = vadd.f32 %v391_v11, %v390_v0  ;;  %v746_v25 = vpop.eup %745  ;;  %v358_v29 = vadd.f32 1.0, %v744_v20  ;;  %v373_v61 = vmul.f32 %v357_v43, %v245_v1  ;;  %v317_v35 = vadd.f32 %v301_v58, %v966_v59 }
 0x108   :  { %v385_v22 = vadd.f32 %v384_v15, %v383_v4  ;;  %v356_v34 = vadd.f32 1.0, %v746_v25  ;;  %753 = vtanh.f32 %v328_v32  ;;  %v299_v38 = vmul.f32 %v283_v19, %v970_v63 }
 0x109   :  { %v393_v27 = vrot.slane %v392_v17, 2  ;;  %v374_v37 = vmul.f32 %v358_v29, %v246_v12  ;;  %v371_v41 = vmul.f32 %v355_v23, %v243_v6  ;;  %v270_v42 = vmul.f32 0.044715, %v985_v26 }
 0x10a   :  { %v386_v33 = vrot.slane %v385_v22, 2  ;;  %v372_v31 = vmul.f32 %v356_v34, %v244_v18  ;;  %v247_v46 = vmul.f32 0.5, %v937_v9  ;;  %v250_v48 = vmul.f32 0.5, %v946_v24 }
 0x10b   :  { %v394_v36 = vadd.f32 %v393_v27, %v392_v17  ;;  %v404_v5 = vadd.f32 %v374_v37, %v373_v61  ;;  %v248_v51 = vmul.f32 0.5, %v956_v28  ;;  %v333_v52 = vmul.f32 0.7978846, %v317_v35 }
 0x10c   :  { %v748_v39 = vpop.eup %747  ;;  %v387_v40 = vadd.f32 %v386_v33, %v385_v22  ;;  %v397_v50 = vadd.f32 %v372_v31, %v371_v41  ;;  %v315_v57 = vadd.f32 %v299_v38, %v970_v63  ;;  %v286_v2 = vmul.f32 %v270_v42, %v985_v26 }
 0x10d   :  { %v750_v44 = vpop.eup %749  ;;  %v395_v45 = vrot.slane %v394_v36, 1  ;;  %v405_v55 = vrot.slane %v404_v5, 4  ;;  %v361_v56 = vadd.f32 1.0, %v748_v39  ;;  %v998_v24 = vadd.f32 %v891_v21, %v962_v54 }
 0x10e   :  { %v388_v49 = vrot.slane %v387_v40, 1  ;;  %v752_v60 = vpop.eup %751  ;;  %v398_v0 = vrot.slane %v397_v50, 4  ;;  %v359_v1 = vadd.f32 1.0, %v750_v44  ;;  %755 = vtanh.f32 %v333_v52 }
 0x10f   :  { %v396_v53 = vadd.f32 %v395_v45, %v394_v36  ;;  %v406_v9 = vadd.f32 %v405_v55, %v404_v5  ;;  %v362_v3 = vadd.f32 1.0, %v752_v60  ;;  %v302_v6 = vmul.f32 %v286_v2, %v985_v26 }
 0x110   :  { %v389_v62 = vadd.f32 %v388_v49, %v387_v40  ;;  %v399_v4 = vadd.f32 %v398_v0, %v397_v50  ;;  %v377_v10 = vmul.f32 %v361_v56, %v249_v30  ;;  %v268_v12 = vmul.f32 0.044715, %v998_v24 }
 0x111   :  { %v440_v28 = vmul.f32 0.0625, %v396_v53  ;;  %v407_v8 = vrot.slane %v406_v9, 2  ;;  %v378_v11 = vmul.f32 %v362_v3, %v250_v48  ;;  %v318_v14 = vadd.f32 %v302_v6, %v985_v26 }
 0x112   :  { %v439_v7 = vmul.f32 0.0625, %v389_v62  ;;  %v400_v13 = vrot.slane %v399_v4, 2  ;;  %v754_v16 = vpop.eup %753  ;;  %v331_v54 = vmul.f32 0.7978846, %v315_v57  ;;  %v284_v18 = vmul.f32 %v268_v12, %v998_v24 }
 0x113   :  { %v448_v43 = vpack.c.bf16 %v440_v28, %v440_v28  ;;  %v408_v17 = vadd.f32 %v407_v8, %v406_v9  ;;  %v418_v21 = vadd.f32 %v378_v11, %v377_v10  ;;  %v360_v19 = vadd.f32 1.0, %v754_v16 }
 0x114   :  { %v447_v15 = vpack.c.bf16 %v439_v7, %v439_v7  ;;  %v401_v47 = vadd.f32 %v400_v13, %v399_v4  ;;  %v334_v20 = vmul.f32 0.7978846, %v318_v14  ;;  %v300_v58 = vmul.f32 %v284_v18, %v998_v24 }
 0x115   :  { %v419_v23 = vrot.slane %v418_v21, 4  ;;  %v409_v25 = vrot.slane %v408_v17, 1  ;;  %v487_v27 = vunpack.c.l.b16 %v448_v43  ;;  %v375_v30 = vmul.f32 %v359_v1, %v247_v46 }
 0x116   :  { %v486_v22 = vunpack.c.l.b16 %v447_v15  ;;  %v402_v29 = vrot.slane %v401_v47, 1  ;;  %v376_v32 = vmul.f32 %v360_v19, %v248_v51  ;;  %757 = vtanh.f32 %v334_v20 }
 0x117   :  { %759 = vtanh.f32 %v331_v54  ;;  %v316_v33 = vadd.f32 %v300_v58, %v998_v24  ;;  %v410_v61 = vadd.f32 %v409_v25, %v408_v17  ;;  %v420_v34 = vadd.f32 %v419_v23, %v418_v21 }
 0x118   :  { %v411_v35 = vadd.f32 %v376_v32, %v375_v30  ;;  %v403_v36 = vadd.f32 %v402_v29, %v401_v47  ;;  %v495_v37 = vsel %vm494_vm2, %v487_v27, %v486_v22  ;;  %v756_v41 = vpop.eup %755  ;;  %v253_v62 = vmul.f32 0.5, %v966_v59 }
 0x119   :  { %v332_v38 = vmul.f32 0.7978846, %v316_v33  ;;  %v421_v39 = vrot.slane %v420_v34, 2  ;;  %v442_v40 = vmul.f32 0.0625, %v410_v61  ;;  %v365_v51 = vadd.f32 1.0, %v756_v41 }
 0x11a   :  { %v412_v31 = vrot.slane %v411_v35, 4  ;;  %v441_v42 = vmul.f32 0.0625, %v403_v36  ;;  %v254_v0 = vmul.f32 0.5, %v985_v26  ;;  %v251_v11 = vmul.f32 0.5, %v970_v63 }
 0x11b   :  { %761 = vtanh.f32 %v332_v38  ;;  %v422_v44 = vadd.f32 %v421_v39, %v420_v34  ;;  %v450_v45 = vpack.c.bf16 %v442_v40, %v442_v40  ;;  %v381_v3 = vmul.f32 %v365_v51, %v253_v62  ;;  %v634_v40 = vld [vmem:[%s1030_s4] ss:$0 sm:$0xff] }
 0x11c   :  { %v413_v5 = vadd.f32 %v412_v31, %v411_v35  ;;  %v449_v46 = vpack.c.bf16 %v441_v42, %v441_v42  ;;  %v252_v12 = vmul.f32 0.5, %v998_v24 }
 0x11d   :  { %v423_v48 = vrot.slane %v422_v44, 1  ;;  %v489_v53 = vunpack.c.l.b16 %v450_v45 }
 0x11e   :  { %v414_v49 = vrot.slane %v413_v5, 2  ;;  %v488_v50 = vunpack.c.l.b16 %v449_v46 }
 0x11f   :  { %v424_v52 = vadd.f32 %v423_v48, %v422_v44 }
 0x120   :  { %v758_v55 = vpop.eup %757  ;;  %v415_v56 = vadd.f32 %v414_v49, %v413_v5  ;;  %v497_v57 = vsel %vm496_vm3, %v488_v50, %v495_v37 }
 0x121   :  { %v760_v60 = vpop.eup %759  ;;  %v366_v1 = vadd.f32 1.0, %v758_v55  ;;  %v499_v2 = vsel %vm498_vm4, %v489_v53, %v497_v57  ;;  %v444_v4 = vmul.f32 0.0625, %v424_v52 }
 0x122   :  { %v416_v9 = vrot.slane %v415_v56, 1  ;;  %v363_v6 = vadd.f32 1.0, %v760_v60 }
 0x123   :  { %v382_v28 = vmul.f32 %v366_v1, %v254_v0  ;;  %v452_v59 = vpack.c.bf16 %v444_v4, %v444_v4 }
 0x124   :  { %v417_v7 = vadd.f32 %v416_v9, %v415_v56  ;;  %v379_v43 = vmul.f32 %v363_v6, %v251_v11 }
 0x125   :  { %v762_v8 = vpop.eup %761  ;;  %v432_v10 = vadd.f32 %v382_v28, %v381_v3  ;;  %v491_v47 = vunpack.c.l.b16 %v452_v59 }
 0x126   :  { %v364_v13 = vadd.f32 1.0, %v762_v8  ;;  %v443_v14 = vmul.f32 0.0625, %v417_v7 }
 0x127   :  { %v433_v15 = vrot.slane %v432_v10, 4 }
 0x128   :  { %v380_v26 = vmul.f32 %v364_v13, %v252_v12  ;;  %v451_v16 = vpack.c.bf16 %v443_v14, %v443_v14 }
 0x129   :  { %v434_v17 = vadd.f32 %v433_v15, %v432_v10 }
 0x12a   :  { %v425_v21 = vadd.f32 %v380_v26, %v379_v43  ;;  %v490_v54 = vunpack.c.l.b16 %v451_v16 }
 0x12b   :  { %v435_v18 = vrot.slane %v434_v17, 2 }
 0x12c   :  { %v426_v19 = vrot.slane %v425_v21, 4  ;;  %v501_v20 = vsel %vm500_vm5, %v490_v54, %v499_v2 }
 0x12d   :  { %v436_v22 = vadd.f32 %v435_v18, %v434_v17  ;;  %v503_v63 = vsel %vm502_vm6, %v491_v47, %v501_v20 }
 0x12e   :  { %v427_v23 = vadd.f32 %v426_v19, %v425_v21 }
 0x12f   :  { %v437_v24 = vrot.slane %v436_v22, 1 }
 0x130   :  { %v428_v58 = vrot.slane %v427_v23, 2 }
 0x131   :  { %v438_v25 = vadd.f32 %v437_v24, %v436_v22 }
 0x132   :  { %v429_v27 = vadd.f32 %v428_v58, %v427_v23 }
 0x133   :  { %v446_v30 = vmul.f32 0.0625, %v438_v25 }
 0x134   :  { %v430_v29 = vrot.slane %v429_v27, 1 }
 0x135   :  { %v454_v61 = vpack.c.bf16 %v446_v30, %v446_v30 }
 0x136   :  { %v431_v32 = vadd.f32 %v430_v29, %v429_v27 }
 0x137   :  { %v493_v36 = vunpack.c.l.b16 %v454_v61 }
 0x138   :  { %v445_v33 = vmul.f32 0.0625, %v431_v32 }
 0x13a   :  { %v453_v34 = vpack.c.bf16 %v445_v33, %v445_v33 }
 0x13c   :  { %v492_v35 = vunpack.c.l.b16 %v453_v34 }
 0x13e   :  { %v505_v37 = vsel %vm504_vm7, %v492_v35, %v503_v63 }
 0x13f   :  { %v507_v38 = vsel %vm506_vm8, %v493_v36, %v505_v37 }
 0x140   :  { %v508_v39 = vpack.c.b16 %v507_v38, %v507_v38 }
 0x142   :  { %705 = vmatmul.mubr.bf16.vlgmr.msra.gmra.mrb[0].mxu1 %v508_v39 }
 0x215   :  { %v592_v41 = vpop.f32.mrb[0].mxu1 }
 0x216   :  { %v593_v31 = vadd.f32 %v634_v40, %v592_v41  ;;  %v706_v42 = vpop.f32.mrb[1].mxu1 }
 0x217   :  { %v595_v44 = vpop.f32.mrb[2].mxu1 }
 0x218   :  { %598 = vst [vmem:[#allocation2] sm:$0xff] %v593_v31  ;;  %v707_v45 = vpop.f32.mrb[3].mxu1 }
 0x219   :  { %774 = shalt.err (!%p771_p4)
}
 0x21a   :  { %s775_s4 = scalar_lea.hbm %s1031_s5, 128 }
 0x21b   :  { %p776_p5 = scmp.ne.s32.totalorder %s1031_s5, %s775_s4  ;;  %p779_p6 = scmp.lt.u32.totalorder %s775_s4, %s1031_s5 }
 0x21d   :  { %p781_p7 = pnand %p779_p6, %p776_p5 }
 0x21f   :  { %784 = shalt.err (!%p781_p7)
}
 0x220   :  { %608 = dma.vmem_to_hbm [thread:$0]  %s606_s1, 128, %s1031_s5, [#allocation3]  }
 0x221   :  { %785 = dma.done.wait [#allocation3], 128  }
 0x222   :  { %786 = vsyncadd [#allocation3], 4294967168 }
 0x223   :  { %612 = vsyncpa [#allocation3], 1 }

</bundles_post_ra>
